<compile_context>
chip_gen: v7x
topology: tpu7x:2x2x1
jax: 0.10.0
libtpu: 0.0.40
codegen_flags: <defaults>
</compile_context>

<pallas_src>
import numpy as np
import jax
import jax.numpy as jnp
from jax.experimental import pallas as pl
from jax.experimental.pallas import tpu as pltpu

# ----------------------------- configuration --------------------------------
K = 8                    # snapshots per cell (first dim of h / kweights)
C = 4                    # input_channels (= conv output channels)
H = W = 8                # spatial size; C*H*W = 256 = width**2
KS = 5                   # input_kernel_size
PAD = (KS - 1) // 2
WIDTH = 16               # width (fc input dim = width**2 = C*H*W)
P = 32                   # output_dim == p == trunk_layers[-1]
TRUNK_LAYERS = [2, 64, 64, 32]
H1 = TRUNK_LAYERS[1]     # trunk hidden width (64)
NY = 64                  # trunk query points per cell
NYP = 128                # lane-padded query points (lane-dense trunk/output)
DT = 0.01
CHW = C * H * W          # 256
B_CELLS = 8              # batch of independent (h, y) cell evaluations


# ------------------------------- the kernel ---------------------------------
def _rcnn_cell_kernel(hx_ref, y_ref, wcnn_ref, fcw_ref, tslab_ref, twgt_ref,
                      out_ref):
    f32 = jnp.float32

    # ---------------- CNN branch (flat (c,i,j) lane layout) -----------------
    hx = hx_ref[...]                                          # (K, CHW)
    bias_rows = wcnn_ref[CHW:CHW + 3, :]                      # (3, CHW)
    conv = (jnp.dot(hx, wcnn_ref[0:CHW, :], preferred_element_type=f32)
            + bias_rows[0:1, :])                              # (K, CHW)
    x2 = DT * jnp.tanh(conv) + hx                             # dt*x1 + h
    # k-weighted reduction -> flat (1, CHW) row (no reshape needed)
    s = jnp.dot(bias_rows[2:3, 0:K], x2, preferred_element_type=f32)
    # fc: (1, CHW) @ (CHW, P)
    b_vec = (jnp.dot(s, fcw_ref[...], preferred_element_type=f32)
             + bias_rows[1:2, 0:P])                           # (1, P)

    # ---------------- trunk (transposed ModifiedMLP, lane-dense) ------------
    y0 = y_ref[0:1, :]                                        # (1, NYP)
    y1 = y_ref[1:2, :]                                        # (1, NYP)
    A = tslab_ref[...]                                        # (3*H1, 8)
    # first layer (U1 | U2 | lin0): depth-2 contraction as VPU broadcast FMAs
    z = jnp.tanh(A[:, 0:1] * y0 + A[:, 1:2] * y1 + A[:, 2:3])  # (3*H1, NYP)
    u = z[0:H1, :]
    v = z[H1:2 * H1, :]
    x = z[2 * H1:3 * H1, :]
    d = u - v
    x = v + x * d                                             # x*u + (1-x)*v
    x = jnp.tanh(jnp.dot(twgt_ref[0:H1, :], x, preferred_element_type=f32)
                 + A[0:H1, 3:4])                              # (H1, NYP)
    x = v + x * d
    t = (jnp.dot(twgt_ref[H1:H1 + P, :], x, preferred_element_type=f32)
         + A[0:P, 4:5])                                       # (P, NYP)

    # ---------------- combine: (1/p) * B @ T^T  (lane-dense row) ------------
    out_ref[...] = (1.0 / P) * jnp.dot(b_vec, t, preferred_element_type=f32)


# ---------------------- one-time parameter preparation -----------------------
def prep_params(params):
    """Host-side, called ONCE per parameter set (not in the per-call path)."""
    (conv_w, conv_b, fc_w, fc_b, kweights,
     U1, b1, U2, b2, lin0_w, lin0_b, lin1_w, lin1_b, lin2_w, lin2_b) = [
        np.asarray(p, np.float32) for p in params]

    # Conv as one dense (CHW, CHW) matrix with zero-padding folded in:
    #   M[ci*H*W + ii*W + jj, co*H*W + i*W + j] = w[co, ci, ii-i+PAD, jj-j+PAD]
    M6 = np.zeros((C, H, W, C, H, W), np.float32)   # [ci, ii, jj, co, i, j]
    for u in range(KS):
        for vv in range(KS):
            tap = conv_w[:, :, u, vv].T             # (ci, co)
            for i in range(H):
                ii = i + u - PAD
                if ii < 0 or ii >= H:
                    continue
                for j in range(W):
                    jj = j + vv - PAD
                    if jj < 0 or jj >= W:
                        continue
                    M6[:, ii, jj, :, i, j] += tap
    mconv = M6.reshape(CHW, CHW)

    # biases / kweights ride as 3 extra rows of the conv weight
    conv_b_row = np.repeat(conv_b, H * W)                        # (CHW,)
    fc_b_row = np.zeros(CHW, np.float32); fc_b_row[:P] = fc_b
    kw_row = np.zeros(CHW, np.float32); kw_row[:K] = kweights.reshape(-1)
    wcnn = np.concatenate(
        [mconv, conv_b_row[None, :], fc_b_row[None, :], kw_row[None, :]],
        axis=0)                                                  # (CHW+3, CHW)

    # fc weight: s lane order (c, i, j) == torch flatten order, so just W.T
    fcwT = np.ascontiguousarray(fc_w.T)                          # (CHW, P)

    # trunk first-layer slab: columns [w_y0 | w_y1 | bias | lin1_b | lin2_b | 0..]
    w0 = np.concatenate([U1[0, :], U2[0, :], lin0_w[:, 0]])
    w1 = np.concatenate([U1[1, :], U2[1, :], lin0_w[:, 1]])
    bc = np.concatenate([b1, b2, lin0_b])
    b1pad = np.zeros(3 * H1, np.float32); b1pad[:H1] = lin1_b
    b2pad = np.zeros(3 * H1, np.float32); b2pad[:P] = lin2_b
    zcol = np.zeros(3 * H1, np.float32)
    tslab = np.stack([w0, w1, bc, b1pad, b2pad, zcol, zcol, zcol], axis=1)

    # lin1 (64,64) and lin2 (32,64) stacked along rows
    twgt = np.concatenate([lin1_w, lin2_w], axis=0)              # (96, 64)

    return tuple(jnp.asarray(p) for p in (wcnn, fcwT, tslab, twgt))


# ------------------------------ jit-able wrapper ------------------------------
def rcnn_cell_forward(h, y, prepped):
    """h: (B, K, C, H, W) f32, y: (B, NY, 2) f32 -> (B, NY, 1) f32.

    Each batch element is one independent RCNNCell.forward(h_b, y_b).
    """
    wcnn, fcwT, tslab, twgt = prepped
    bsz = h.shape[0]

    hx = h.reshape(bsz, K, CHW)                                  # free reshape
    y_t = jnp.transpose(y, (0, 2, 1))                            # (B, 2, NY)
    y_t = jnp.pad(y_t, ((0, 0), (0, 0), (0, NYP - NY)))          # lane-dense

    out = pl.pallas_call(
        _rcnn_cell_kernel,
        out_shape=jax.ShapeDtypeStruct((bsz, 1, NYP), jnp.float32),
        grid=(bsz,),
        in_specs=[
            pl.BlockSpec((None, K, CHW), lambda b: (b, 0, 0)),    # streamed
            pl.BlockSpec((None, 2, NYP), lambda b: (b, 0, 0)),    # streamed
            pl.BlockSpec((CHW + 3, CHW), lambda b: (0, 0)),       # resident
            pl.BlockSpec((CHW, P), lambda b: (0, 0)),             # resident
            pl.BlockSpec((3 * H1, 8), lambda b: (0, 0)),          # resident
            pl.BlockSpec((H1 + P, H1), lambda b: (0, 0)),         # resident
        ],
        out_specs=pl.BlockSpec((None, 1, NYP), lambda b: (b, 0, 0)),
        compiler_params=pltpu.CompilerParams(
            dimension_semantics=("parallel",)),
    )(hx, y_t, wcnn, fcwT, tslab, twgt)

    return out[:, 0, :NY][..., None]                              # (B, NY, 1)


# --------------------------- deterministic params ----------------------------
def _xavier(key, shape, fan_in, fan_out):
    std = np.sqrt(2.0 / (fan_in + fan_out))
    return std * jax.random.normal(key, shape, dtype=jnp.float32)


def make_params(key):
    ks = jax.random.split(key, 15)
    conv_w = 0.02 * _xavier(ks[0], (C, C, KS, KS), C * KS * KS, C * KS * KS)
    conv_b = 0.1 * jax.random.normal(ks[1], (C,), dtype=jnp.float32)
    fc_w = _xavier(ks[2], (P, WIDTH ** 2), WIDTH ** 2, P)
    fc_b = 0.1 * jax.random.normal(ks[3], (P,), dtype=jnp.float32)
    kweights = _xavier(ks[4], (K, 1), 1, 1)
    U1 = _xavier(ks[5], (TRUNK_LAYERS[0], TRUNK_LAYERS[1]), TRUNK_LAYERS[0], TRUNK_LAYERS[1])
    b1 = 0.1 * jax.random.normal(ks[6], (TRUNK_LAYERS[1],), dtype=jnp.float32)
    U2 = _xavier(ks[7], (TRUNK_LAYERS[0], TRUNK_LAYERS[1]), TRUNK_LAYERS[0], TRUNK_LAYERS[1])
    b2 = 0.1 * jax.random.normal(ks[8], (TRUNK_LAYERS[1],), dtype=jnp.float32)
    lin0_w = _xavier(ks[9], (TRUNK_LAYERS[1], TRUNK_LAYERS[0]), TRUNK_LAYERS[0], TRUNK_LAYERS[1])
    lin0_b = 0.1 * jax.random.normal(ks[10], (TRUNK_LAYERS[1],), dtype=jnp.float32)
    lin1_w = _xavier(ks[11], (TRUNK_LAYERS[2], TRUNK_LAYERS[1]), TRUNK_LAYERS[1], TRUNK_LAYERS[2])
    lin1_b = 0.1 * jax.random.normal(ks[12], (TRUNK_LAYERS[2],), dtype=jnp.float32)
    lin2_w = _xavier(ks[13], (TRUNK_LAYERS[3], TRUNK_LAYERS[2]), TRUNK_LAYERS[2], TRUNK_LAYERS[3])
    lin2_b = 0.1 * jax.random.normal(ks[14], (TRUNK_LAYERS[3],), dtype=jnp.float32)
    return (conv_w, conv_b, fc_w, fc_b, kweights,
            U1, b1, U2, b2, lin0_w, lin0_b, lin1_w, lin1_b, lin2_w, lin2_b)


# ------------------------------- JAX reference --------------------------------
def reference_forward(h, y, params):
    """Single-cell reference: h (K,C,H,W), y (NY,2) -> (NY,1)."""
    (conv_w, conv_b, fc_w, fc_b, kweights,
     U1, b1, U2, b2, lin0_w, lin0_b, lin1_w, lin1_b, lin2_w, lin2_b) = params
    hi = jax.lax.Precision.HIGHEST

    conv = jax.lax.conv_general_dilated(
        h, conv_w, window_strides=(1, 1), padding=((PAD, PAD), (PAD, PAD)),
        dimension_numbers=('NCHW', 'OIHW', 'NCHW'), precision=hi)
    x1 = jnp.tanh(conv + conv_b[None, :, None, None])
    s = jnp.sum(kweights.reshape(K, 1, 1, 1) * (DT * x1 + h), axis=0)   # (C,H,W)
    B = jnp.matmul(s.reshape(1, -1), fc_w.T, precision=hi) + fc_b       # (1,P)

    U = jnp.tanh(jnp.matmul(y, U1, precision=hi) + b1)
    V = jnp.tanh(jnp.matmul(y, U2, precision=hi) + b2)
    x = jnp.tanh(jnp.matmul(y, lin0_w.T, precision=hi) + lin0_b)
    x = x * U + (1.0 - x) * V
    x = jnp.tanh(jnp.matmul(x, lin1_w.T, precision=hi) + lin1_b)
    x = x * U + (1.0 - x) * V
    T = jnp.matmul(x, lin2_w.T, precision=hi) + lin2_b                  # (NY,P)
    return (1.0 / P) * jnp.matmul(T, B.T, precision=hi)                 # (NY,1)


# ----------------------------------- main -------------------------------------
if __name__ == "__main__":
    key = jax.random.PRNGKey(0)
    k_h, k_y, k_p = jax.random.split(key, 3)

    h = jax.random.normal(k_h, (B_CELLS, K, C, H, W), dtype=jnp.float32)
    y = jax.random.normal(k_y, (B_CELLS, NY, TRUNK_LAYERS[0]), dtype=jnp.float32)
    params = make_params(k_p)

    # one-time parameter prep (hoisted out of the per-call path)
    prepped = prep_params(params)

    fwd = jax.jit(rcnn_cell_forward)
    out = jax.block_until_ready(fwd(h, y, prepped))

    ref = jax.block_until_ready(
        jax.vmap(lambda hh, yy: reference_forward(hh, yy, params))(h, y))

    assert out.shape == (B_CELLS, NY, 1), out.shape
    assert np.allclose(np.asarray(out), np.asarray(ref), rtol=1e-2, atol=1e-4), (
        "mismatch", float(np.max(np.abs(np.asarray(out) - np.asarray(ref)))))

    print("KERNEL_OK")
</pallas_src>

<mosaic_0001>
module attributes {stable_mosaic.version = 11 : i64} {
  func.func @_rcnn_cell_kernel(%arg0: i32, %arg1: memref<1x8x256xf32, #tpu.memory_space<vmem>>, %arg2: memref<1x2x128xf32, #tpu.memory_space<vmem>>, %arg3: memref<259x256xf32, #tpu.memory_space<vmem>>, %arg4: memref<256x32xf32, #tpu.memory_space<vmem>>, %arg5: memref<192x8xf32, #tpu.memory_space<vmem>>, %arg6: memref<96x64xf32, #tpu.memory_space<vmem>>, %arg7: memref<1x1x128xf32, #tpu.memory_space<vmem>>) attributes {dimension_semantics = [#tpu.dimension_semantics<parallel>], iteration_bounds = array<i64: 8>, scalar_prefetch = 0 : i64, scratch_operands = 0 : i64, tpu.core_type = #tpu.core_type<tc>, window_params = [{transform_indices = @transform_0, window_bounds = array<i64: 1, 8, 256>}, {transform_indices = @transform_1, window_bounds = array<i64: 1, 2, 128>}, {pipeline_mode = #tpu.pipeline_mode<synchronous>, transform_indices = @transform_2, window_bounds = array<i64: 259, 256>}, {pipeline_mode = #tpu.pipeline_mode<synchronous>, transform_indices = @transform_3, window_bounds = array<i64: 256, 32>}, {pipeline_mode = #tpu.pipeline_mode<synchronous>, transform_indices = @transform_4, window_bounds = array<i64: 192, 8>}, {pipeline_mode = #tpu.pipeline_mode<synchronous>, transform_indices = @transform_5, window_bounds = array<i64: 96, 64>}, {transform_indices = @transform_6, window_bounds = array<i64: 1, 1, 128>}]} {
    %c0 = arith.constant 0 : index
    %c0_0 = arith.constant 0 : index
    %c0_1 = arith.constant 0 : index
    %0 = vector.load %arg1[%c0, %c0_0, %c0_1] : memref<1x8x256xf32, #tpu.memory_space<vmem>>, vector<1x8x256xf32>
    %1 = vector.shape_cast %0 : vector<1x8x256xf32> to vector<8x256xf32>
    %c256 = arith.constant 256 : index
    %c0_2 = arith.constant 0 : index
    %2 = vector.load %arg3[%c256, %c0_2] : memref<259x256xf32, #tpu.memory_space<vmem>>, vector<3x256xf32>
    %c0_3 = arith.constant 0 : index
    %c0_4 = arith.constant 0 : index
    %3 = vector.load %arg3[%c0_3, %c0_4] : memref<259x256xf32, #tpu.memory_space<vmem>>, vector<256x256xf32>
    %cst = arith.constant dense<0.000000e+00> : vector<8x256xf32>
    %4 = tpu.matmul %1, %3, %cst {dimension_numbers = #tpu.dot_dimension_numbers<[1], [0], [0], [1], [0, 0, 1, 1], [], []>} : vector<8x256xf32>, vector<256x256xf32>, vector<8x256xf32> -> vector<8x256xf32>
    %5 = vector.extract_strided_slice %2 {offsets = [0, 0], sizes = [1, 256], strides = [1, 1]} : vector<3x256xf32> to vector<1x256xf32>
    %6 = vector.broadcast %5 : vector<1x256xf32> to vector<8x256xf32>
    %7 = arith.addf %4, %6 : vector<8x256xf32>
    %8 = math.tanh %7 : vector<8x256xf32>
    %cst_5 = arith.constant 0.00999999977 : f32
    %9 = vector.broadcast %cst_5 : f32 to vector<8x256xf32>
    %10 = arith.mulf %9, %8 : vector<8x256xf32>
    %11 = arith.addf %10, %1 : vector<8x256xf32>
    %12 = vector.extract_strided_slice %2 {offsets = [2, 0], sizes = [1, 8], strides = [1, 1]} : vector<3x256xf32> to vector<1x8xf32>
    %cst_6 = arith.constant dense<0.000000e+00> : vector<1x256xf32>
    %13 = tpu.matmul %12, %11, %cst_6 {dimension_numbers = #tpu.dot_dimension_numbers<[1], [0], [0], [1], [0, 0, 1, 1], [], []>} : vector<1x8xf32>, vector<8x256xf32>, vector<1x256xf32> -> vector<1x256xf32>
    %c0_7 = arith.constant 0 : index
    %c0_8 = arith.constant 0 : index
    %14 = vector.load %arg4[%c0_7, %c0_8] : memref<256x32xf32, #tpu.memory_space<vmem>>, vector<256x32xf32>
    %cst_9 = arith.constant dense<0.000000e+00> : vector<1x32xf32>
    %15 = tpu.matmul %13, %14, %cst_9 {dimension_numbers = #tpu.dot_dimension_numbers<[1], [0], [0], [1], [0, 0, 1, 1], [], []>} : vector<1x256xf32>, vector<256x32xf32>, vector<1x32xf32> -> vector<1x32xf32>
    %16 = vector.extract_strided_slice %2 {offsets = [1, 0], sizes = [1, 32], strides = [1, 1]} : vector<3x256xf32> to vector<1x32xf32>
    %17 = arith.addf %15, %16 : vector<1x32xf32>
    %c0_10 = arith.constant 0 : index
    %c0_11 = arith.constant 0 : index
    %c0_12 = arith.constant 0 : index
    %18 = vector.load %arg2[%c0_10, %c0_11, %c0_12] : memref<1x2x128xf32, #tpu.memory_space<vmem>>, vector<1x1x128xf32>
    %19 = vector.shape_cast %18 : vector<1x1x128xf32> to vector<1x128xf32>
    %c0_13 = arith.constant 0 : index
    %c1 = arith.constant 1 : index
    %c0_14 = arith.constant 0 : index
    %20 = vector.load %arg2[%c0_13, %c1, %c0_14] : memref<1x2x128xf32, #tpu.memory_space<vmem>>, vector<1x1x128xf32>
    %21 = vector.shape_cast %20 : vector<1x1x128xf32> to vector<1x128xf32>
    %c0_15 = arith.constant 0 : index
    %c0_16 = arith.constant 0 : index
    %22 = vector.load %arg5[%c0_15, %c0_16] : memref<192x8xf32, #tpu.memory_space<vmem>>, vector<192x8xf32>
    %23 = vector.extract_strided_slice %22 {offsets = [0, 0], sizes = [192, 1], strides = [1, 1]} : vector<192x8xf32> to vector<192x1xf32>
    %24 = vector.broadcast %23 : vector<192x1xf32> to vector<192x128xf32>
    %25 = vector.broadcast %19 : vector<1x128xf32> to vector<192x128xf32>
    %26 = arith.mulf %24, %25 : vector<192x128xf32>
    %27 = vector.extract_strided_slice %22 {offsets = [0, 1], sizes = [192, 1], strides = [1, 1]} : vector<192x8xf32> to vector<192x1xf32>
    %28 = vector.broadcast %27 : vector<192x1xf32> to vector<192x128xf32>
    %29 = vector.broadcast %21 : vector<1x128xf32> to vector<192x128xf32>
    %30 = arith.mulf %28, %29 : vector<192x128xf32>
    %31 = arith.addf %26, %30 : vector<192x128xf32>
    %32 = vector.extract_strided_slice %22 {offsets = [0, 2], sizes = [192, 1], strides = [1, 1]} : vector<192x8xf32> to vector<192x1xf32>
    %33 = vector.broadcast %32 : vector<192x1xf32> to vector<192x128xf32>
    %34 = arith.addf %31, %33 : vector<192x128xf32>
    %35 = math.tanh %34 : vector<192x128xf32>
    %36 = vector.extract_strided_slice %35 {offsets = [0, 0], sizes = [64, 128], strides = [1, 1]} : vector<192x128xf32> to vector<64x128xf32>
    %37 = vector.extract_strided_slice %35 {offsets = [64, 0], sizes = [64, 128], strides = [1, 1]} : vector<192x128xf32> to vector<64x128xf32>
    %38 = vector.extract_strided_slice %35 {offsets = [128, 0], sizes = [64, 128], strides = [1, 1]} : vector<192x128xf32> to vector<64x128xf32>
    %39 = arith.subf %36, %37 : vector<64x128xf32>
    %40 = arith.mulf %38, %39 : vector<64x128xf32>
    %41 = arith.addf %37, %40 : vector<64x128xf32>
    %c0_17 = arith.constant 0 : index
    %c0_18 = arith.constant 0 : index
    %42 = vector.load %arg6[%c0_17, %c0_18] : memref<96x64xf32, #tpu.memory_space<vmem>>, vector<64x64xf32>
    %cst_19 = arith.constant dense<0.000000e+00> : vector<64x128xf32>
    %43 = tpu.matmul %42, %41, %cst_19 {dimension_numbers = #tpu.dot_dimension_numbers<[1], [0], [0], [1], [0, 0, 1, 1], [], []>} : vector<64x64xf32>, vector<64x128xf32>, vector<64x128xf32> -> vector<64x128xf32>
    %44 = vector.extract_strided_slice %22 {offsets = [0, 3], sizes = [64, 1], strides = [1, 1]} : vector<192x8xf32> to vector<64x1xf32>
    %45 = vector.broadcast %44 : vector<64x1xf32> to vector<64x128xf32>
    %46 = arith.addf %43, %45 : vector<64x128xf32>
    %47 = math.tanh %46 : vector<64x128xf32>
    %48 = arith.mulf %47, %39 : vector<64x128xf32>
    %49 = arith.addf %37, %48 : vector<64x128xf32>
    %c64 = arith.constant 64 : index
    %c0_20 = arith.constant 0 : index
    %50 = vector.load %arg6[%c64, %c0_20] : memref<96x64xf32, #tpu.memory_space<vmem>>, vector<32x64xf32>
    %cst_21 = arith.constant dense<0.000000e+00> : vector<32x128xf32>
    %51 = tpu.matmul %50, %49, %cst_21 {dimension_numbers = #tpu.dot_dimension_numbers<[1], [0], [0], [1], [0, 0, 1, 1], [], []>} : vector<32x64xf32>, vector<64x128xf32>, vector<32x128xf32> -> vector<32x128xf32>
    %52 = vector.extract_strided_slice %22 {offsets = [0, 4], sizes = [32, 1], strides = [1, 1]} : vector<192x8xf32> to vector<32x1xf32>
    %53 = vector.broadcast %52 : vector<32x1xf32> to vector<32x128xf32>
    %54 = arith.addf %51, %53 : vector<32x128xf32>
    %cst_22 = arith.constant dense<0.000000e+00> : vector<1x128xf32>
    %55 = tpu.matmul %17, %54, %cst_22 {dimension_numbers = #tpu.dot_dimension_numbers<[1], [0], [0], [1], [0, 0, 1, 1], [], []>} : vector<1x32xf32>, vector<32x128xf32>, vector<1x128xf32> -> vector<1x128xf32>
    %cst_23 = arith.constant 3.125000e-02 : f32
    %56 = vector.broadcast %cst_23 : f32 to vector<1x128xf32>
    %57 = arith.mulf %56, %55 : vector<1x128xf32>
    %c0_24 = arith.constant 0 : index
    %c0_25 = arith.constant 0 : index
    %c0_26 = arith.constant 0 : index
    %58 = vector.load %arg7[%c0_24, %c0_25, %c0_26] : memref<1x1x128xf32, #tpu.memory_space<vmem>>, vector<1x1x128xf32>
    %59 = vector.shape_cast %58 : vector<1x1x128xf32> to vector<1x128xf32>
    %60 = vector.shape_cast %57 : vector<1x128xf32> to vector<1x1x128xf32>
    tpu.vector_store %arg7[%c0_24, %c0_25, %c0_26], %60 {strides = array<i32>} : memref<1x1x128xf32, #tpu.memory_space<vmem>>, vector<1x1x128xf32>,
    return
  }
  func.func @transform_0(%arg0: i32) -> (i32, i32, i32) {
    %c0_i32 = arith.constant 0 : i32
    %c0_i32_0 = arith.constant 0 : i32
    %c0_i32_1 = arith.constant 0 : i32
    return %arg0, %c0_i32, %c0_i32_0 : i32, i32, i32
  }
  func.func @transform_1(%arg0: i32) -> (i32, i32, i32) {
    %c0_i32 = arith.constant 0 : i32
    %c0_i32_0 = arith.constant 0 : i32
    %c0_i32_1 = arith.constant 0 : i32
    return %arg0, %c0_i32, %c0_i32_0 : i32, i32, i32
  }
  func.func @transform_2(%arg0: i32) -> (i32, i32) {
    %c0_i32 = arith.constant 0 : i32
    %c0_i32_0 = arith.constant 0 : i32
    %c0_i32_1 = arith.constant 0 : i32
    return %c0_i32, %c0_i32_0 : i32, i32
  }
  func.func @transform_3(%arg0: i32) -> (i32, i32) {
    %c0_i32 = arith.constant 0 : i32
    %c0_i32_0 = arith.constant 0 : i32
    %c0_i32_1 = arith.constant 0 : i32
    return %c0_i32, %c0_i32_0 : i32, i32
  }
  func.func @transform_4(%arg0: i32) -> (i32, i32) {
    %c0_i32 = arith.constant 0 : i32
    %c0_i32_0 = arith.constant 0 : i32
    %c0_i32_1 = arith.constant 0 : i32
    return %c0_i32, %c0_i32_0 : i32, i32
  }
  func.func @transform_5(%arg0: i32) -> (i32, i32) {
    %c0_i32 = arith.constant 0 : i32
    %c0_i32_0 = arith.constant 0 : i32
    %c0_i32_1 = arith.constant 0 : i32
    return %c0_i32, %c0_i32_0 : i32, i32
  }
  func.func @transform_6(%arg0: i32) -> (i32, i32, i32) {
    %c0_i32 = arith.constant 0 : i32
    %c0_i32_0 = arith.constant 0 : i32
    %c0_i32_1 = arith.constant 0 : i32
    return %arg0, %c0_i32, %c0_i32_0 : i32, i32, i32
  }
}

</mosaic_0001>

<bundles_post_ra>
// kernel: rcnn_cell_forward.1
= control target key start
LH: loop header
LB: loop body
LE: loop exit
PB: predicated region body
PF: predicated region fallthrough
CT: control target
= control target key end

     0   :  { %s1991_s21 = smov 0   ;;  %s2834_s0 = inlined_call_operand.vmem [shape: f32[8,8,256], index: 0, kind: input, shape index: {}]   ;;  %s2835_s1 = inlined_call_operand.vmem [shape: f32[8,2,128], index: 1, kind: input, shape index: {}]   ;;  %s2836_s2 = inlined_call_operand.vmem [shape: f32[259,256], index: 2, kind: input, shape index: {}]   ;;  %s2837_s3 = inlined_call_operand.vmem [shape: f32[256,32], index: 3, kind: input, shape index: {}]   ;;  %s2838_s4 = inlined_call_operand.vmem [shape: f32[192,8], index: 4, kind: input, shape index: {}]   ;;  %s2839_s5 = inlined_call_operand.vmem [shape: f32[96,64], index: 5, kind: input, shape index: {}]   ;;  %s2840_s6 = inlined_call_operand.vmem [shape: f32[8,1,128], index: 6, kind: output, shape index: {}]  }
   0x1 LB: > { %s1534_s22 = sadd.s32 4294967295, %s1946_s21   ;;  %p1538_p0 = scmp.ge.s32.totalorder %s1946_s21, 1  ;;  %s1946_s21 = sphi %s1991_s21, %s16_s21  }
   0x2   : > { %p221_p1 = scmp.lt.s32.totalorder %s1946_s21, 9 }
   0x4   : > { %p222_p2 = pnand %p1538_p0, %p221_p1 }
   0x5   : > { %v270_v0 = vld [vmem:[%s2836_s2 + $0x8] sm:$0xff] (!%p222_p2)  ;;  %v272_v1 = vld [vmem:[%s2836_s2 + $0x18] sm:$0xff] (!%p222_p2)  ;;  %v269_v2 = vld [vmem:[%s2836_s2] sm:$0xff] (!%p222_p2)  ;;  %v1948_v7 = vmov (!%p222_p2), 0   ;;  %p253_p3 = scmp.lt.s32.totalorder (!%p222_p2), %s1534_s22, 7  ;;  %v1949_v61 = vmov (!%p222_p2), 1  }
   0x6   : > { %225 = sbr.rel (%p222_p2) target bundleno = 1221 (0x4c5), region = 44  ;;  %v1690_v3 = vpack.c.bf16 (!%p222_p2), %v272_v1, %v270_v0  ;;  %v271_v4 = vld [vmem:[%s2836_s2 + $0x10] sm:$0xff] (!%p222_p2)  ;;  %v274_v5 = vld [vmem:[%s2836_s2 + $0x28] sm:$0xff] (!%p222_p2)  ;;  %v276_v6 = vld [vmem:[%s2836_s2 + $0x38] sm:$0xff] (!%p222_p2)  ;;  %1841 = vset.pattern.permute.xlu1 (!%p222_p2), %v1948_v7  ;;  %1840 = vset.pattern.permute.xlu0 (!%p222_p2), %v1948_v7  ;;  %vm420_vm0 = vcmask (!%p222_p2), 64512   ;;  %vm1128_vm1 = vcmask (!%p222_p2), 523264  }
   0x7   : > { %v1692_v8 = vpack.c.bf16 (!%p222_p2), %v271_v4, %v269_v2  ;;  %v1694_v9 = vpack.c.bf16 (!%p222_p2), %v276_v6, %v274_v5  ;;  %v273_v10 = vld [vmem:[%s2836_s2 + $0x20] sm:$0xff] (!%p222_p2)  ;;  %v275_v11 = vld [vmem:[%s2836_s2 + $0x30] sm:$0xff] (!%p222_p2)  ;;  %v278_v12 = vld [vmem:[%s2836_s2 + $0x48] sm:$0xff] (!%p222_p2)  ;;  %vm1955_vm2 = vmmov (!%p222_p2), 0   ;;  %vm1399_vm3 = vcmask (!%p222_p2), 261120  }
   0x8   : > { %1691 = vmatprep.subr.bf16.mxu0 (!%p222_p2), %v1690_v3  ;;  %v280_v13 = vld [vmem:[%s2836_s2 + $0x58] sm:$0xff] (!%p222_p2)  ;;  %v1696_v14 = vpack.c.bf16 (!%p222_p2), %v275_v11, %v273_v10  ;;  %v277_v16 = vld [vmem:[%s2836_s2 + $0x40] sm:$0xff] (!%p222_p2)  ;;  %v279_v17 = vld [vmem:[%s2836_s2 + $0x50] sm:$0xff] (!%p222_p2) }
   0x9   : > { %1693 = vmatpush1.bf16.msra.mxu0 (!%p222_p2), %v1692_v8  ;;  %v1698_v15 = vpack.c.bf16 (!%p222_p2), %v280_v13, %v278_v12  ;;  %v282_v18 = vld [vmem:[%s2836_s2 + $0x68] sm:$0xff] (!%p222_p2)  ;;  %v284_v19 = vld [vmem:[%s2836_s2 + $0x78] sm:$0xff] (!%p222_p2)  ;;  %v1700_v20 = vpack.c.bf16 (!%p222_p2), %v279_v17, %v277_v16  ;;  %v281_v22 = vld [vmem:[%s2836_s2 + $0x60] sm:$0xff] (!%p222_p2) }
   0xa   : > { %1695 = vmatprep.subr.bf16.mxu0 (!%p222_p2), %v1694_v9  ;;  %v1702_v21 = vpack.c.bf16 (!%p222_p2), %v284_v19, %v282_v18  ;;  %v283_v23 = vld [vmem:[%s2836_s2 + $0x70] sm:$0xff] (!%p222_p2)  ;;  %v286_v24 = vld [vmem:[%s2836_s2 + $0x88] sm:$0xff] (!%p222_p2)  ;;  %v288_v25 = vld [vmem:[%s2836_s2 + $0x98] sm:$0xff] (!%p222_p2) }
   0xb   : > { %v1704_v26 = vpack.c.bf16 (!%p222_p2), %v283_v23, %v281_v22  ;;  %v1706_v27 = vpack.c.bf16 (!%p222_p2), %v288_v25, %v286_v24  ;;  %v285_v28 = vld [vmem:[%s2836_s2 + $0x80] sm:$0xff] (!%p222_p2)  ;;  %v287_v29 = vld [vmem:[%s2836_s2 + $0x90] sm:$0xff] (!%p222_p2)  ;;  %v290_v30 = vld [vmem:[%s2836_s2 + $0xa8] sm:$0xff] (!%p222_p2) }
   0xc   : > { %v292_v31 = vld [vmem:[%s2836_s2 + $0xb8] sm:$0xff] (!%p222_p2)  ;;  %v1708_v32 = vpack.c.bf16 (!%p222_p2), %v287_v29, %v285_v28  ;;  %v289_v34 = vld [vmem:[%s2836_s2 + $0xa0] sm:$0xff] (!%p222_p2)  ;;  %v291_v35 = vld [vmem:[%s2836_s2 + $0xb0] sm:$0xff] (!%p222_p2) }
   0xd   : > { %1697 = vmatpush1.bf16.msra.mxu0 %v1696_v14  ;;  %s2842_s22 = smov (!%p253_p3, %s1534_s22), 7  ;;  %v1710_v33 = vpack.c.bf16 %v292_v31, %v290_v30  ;;  %v294_v36 = vld [vmem:[%s2836_s2 + $0xc8] sm:$0xff]  ;;  %v296_v37 = vld [vmem:[%s2836_s2 + $0xd8] sm:$0xff]  ;;  %v1712_v38 = vpack.c.bf16 %v291_v35, %v289_v34  ;;  %v293_v40 = vld [vmem:[%s2836_s2 + $0xc0] sm:$0xff] }
   0xe   : > { %1699 = vmatprep.subr.bf16.mxu0 %v1698_v15  ;;  %s1560_s23 = sshll.u32 %s2842_s22, 4  ;;  %v1714_v39 = vpack.c.bf16 %v296_v37, %v294_v36  ;;  %v295_v41 = vld [vmem:[%s2836_s2 + $0xd0] sm:$0xff]  ;;  %v298_v43 = vld [vmem:[%s2836_s2 + $0xe8] sm:$0xff]  ;;  %v300_v44 = vld [vmem:[%s2836_s2 + $0xf8] sm:$0xff]  ;;  %s1541_s7 = sshll.u32 %s2842_s22, 1 }
   0xf   : > { %s2089_s10 = scalar_lea.vmem %s2834_s0, %s1560_s23  ;;  %v2110_v45 = vld [vmem:[%s2838_s4 + $0x40] sm:$0xff]  ;;  %v1716_v46 = vpack.c.bf16 %v295_v41, %v293_v40  ;;  %v2116_v47 = vld [vmem:[%s2838_s4 + $0x48] sm:$0xff]  ;;  %v1718_v49 = vpack.c.bf16 %v300_v44, %v298_v43  ;;  %v299_v51 = vld [vmem:[%s2836_s2 + $0xf0] sm:$0xff]  ;;  %s261_s11 = scalar_lea.vmem %s2835_s1, %s1541_s7 }
  0x10   : > { %v2098_v42 = vld [vmem:[%s2089_s10 + $0x8] sm:$0xff]  ;;  %666 = vperm.xlu1 %1841, %v2110_v45   ;;  %v2121_v48 = vld [vmem:[%s2838_s4] sm:$0xff]  ;;  %v304_v53 = vld [vmem:[%s2836_s2 + $0x118] sm:$0xff]  ;;  %s264_s25 = scalar_lea.vmem %s2840_s6, %s2842_s22 }
  0x11   : > { %1701 = vmatpush1.bf16.msra.mxu0 %v1700_v20  ;;  %405 = vmatprep.mubr.f32.mxu0 %v2098_v42  ;;  %v297_v50 = vld [vmem:[%s2836_s2 + $0xe0] sm:$0xff]  ;;  %v302_v52 = vld [vmem:[%s2836_s2 + $0x108] sm:$0xff]  ;;  %v303_v58 = vld [vmem:[%s2836_s2 + $0x110] sm:$0xff] }
  0x12   : > { %1703 = vmatprep.subr.bf16.mxu0 %v1702_v21  ;;  %626 = vperm.xlu0 %1840, %v2121_v48   ;;  %v1720_v54 = vpack.c.bf16 %v299_v51, %v297_v50  ;;  %v2140_v55 = vld [vmem:[%s2838_s4 + $0x8] sm:$0xff]  ;;  %v1722_v56 = vpack.c.bf16 %v304_v53, %v302_v52  ;;  %v301_v57 = vld [vmem:[%s2836_s2 + $0x100] sm:$0xff]  ;;  %v308_v60 = vld [vmem:[%s2836_s2 + $0x138] sm:$0xff] }
  0x13   : > { %v306_v59 = vld [vmem:[%s2836_s2 + $0x128] sm:$0xff]  ;;  %v1724_v62 = vpack.c.bf16 %v303_v58, %v301_v57  ;;  %v305_v1 = vld [vmem:[%s2836_s2 + $0x120] sm:$0xff]  ;;  %v307_v2 = vld [vmem:[%s2836_s2 + $0x130] sm:$0xff]  ;;  %v1950_v58 = vmov 2  }
  0x14   : > { %671 = vperm.xlu1 %1841, %v2116_v47   ;;  %v2160_v63 = vld [vmem:[%s2838_s4 + $0x88] sm:$0xff]  ;;  %v1726_v0 = vpack.c.bf16 %v308_v60, %v306_v59  ;;  %v312_v4 = vld [vmem:[%s2836_s2 + $0x158] sm:$0xff]  ;;  %v2178_v5 = vld [vmem:[%s2838_s4 + $0x10] sm:$0xff]  ;;  %v1728_v6 = vpack.c.bf16 %v307_v2, %v305_v1 }
  0x15   : > { %1705 = vmatpush1.bf16.msra.mxu0 %v1704_v26  ;;  %v310_v3 = vld [vmem:[%s2836_s2 + $0x148] sm:$0xff]  ;;  %v309_v9 = vld [vmem:[%s2836_s2 + $0x140] sm:$0xff]  ;;  %v311_v10 = vld [vmem:[%s2836_s2 + $0x150] sm:$0xff] }
  0x16   : > { %1707 = vmatprep.subr.bf16.mxu0 %v1706_v27  ;;  %631 = vperm.xlu0 %1840, %v2140_v55   ;;  %v1730_v8 = vpack.c.bf16 %v312_v4, %v310_v3  ;;  %v314_v11 = vld [vmem:[%s2836_s2 + $0x168] sm:$0xff]  ;;  %v316_v12 = vld [vmem:[%s2836_s2 + $0x178] sm:$0xff]  ;;  %v2197_v13 = vld [vmem:[%s2838_s4 + $0x80] sm:$0xff]  ;;  %v1732_v15 = vpack.c.bf16 %v311_v10, %v309_v9 }
  0x17   : > { %v2202_v14 = vld [vmem:[%s2838_s4 + $0x50] sm:$0xff]  ;;  %v1734_v16 = vpack.c.bf16 %v316_v12, %v314_v11  ;;  %v313_v17 = vld [vmem:[%s2836_s2 + $0x160] sm:$0xff]  ;;  %v318_v19 = vld [vmem:[%s2836_s2 + $0x188] sm:$0xff]  ;;  %v1951_v12 = vmov 0.0  }
  0x18   : > { %1842 = vset.pattern.permute.xlu1 %v1949_v61  ;;  %v315_v18 = vld [vmem:[%s2836_s2 + $0x170] sm:$0xff]  ;;  %v320_v20 = vld [vmem:[%s2836_s2 + $0x198] sm:$0xff]  ;;  %v317_v24 = vld [vmem:[%s2836_s2 + $0x180] sm:$0xff]  ;;  %487 = vmatprep.mubr.f32.mxu1 %v1951_v12 }
  0x19   : > { %1709 = vmatpush1.bf16.msra.mxu0 %v1708_v32  ;;  %777 = vperm.xlu1 %1842, %v2140_v55   ;;  %v2222_v21 = vld [vmem:[%s2838_s4 + $0x90] sm:$0xff]  ;;  %v1736_v22 = vpack.c.bf16 %v315_v18, %v313_v17  ;;  %v1738_v23 = vpack.c.bf16 %v320_v20, %v318_v19  ;;  %v322_v26 = vld [vmem:[%s2836_s2 + $0x1a8] sm:$0xff]  ;;  %v324_v27 = vld [vmem:[%s2836_s2 + $0x1b8] sm:$0xff] }
  0x1a   : > { %1711 = vmatprep.subr.bf16.mxu0 %v1710_v33  ;;  %711 = vperm.xlu0 %1840, %v2160_v63   ;;  %v319_v25 = vld [vmem:[%s2836_s2 + $0x190] sm:$0xff]  ;;  %v2242_v28 = vld [vmem:[%s2838_s4 + $0x20] sm:$0xff]  ;;  %v1742_v30 = vpack.c.bf16 %v324_v27, %v322_v26  ;;  %v326_v33 = vld [vmem:[%s2836_s2 + $0x1c8] sm:$0xff] }
  0x1b   : > { %v1740_v29 = vpack.c.bf16 %v319_v25, %v317_v24  ;;  %v321_v31 = vld [vmem:[%s2836_s2 + $0x1a0] sm:$0xff]  ;;  %v323_v32 = vld [vmem:[%s2836_s2 + $0x1b0] sm:$0xff]  ;;  %v328_v34 = vld [vmem:[%s2836_s2 + $0x1d8] sm:$0xff] }
  0x1c   : > { %v2261_v35 = vld [vmem:[%s2838_s4 + $0x68] sm:$0xff]  ;;  %v1744_v36 = vpack.c.bf16 %v323_v32, %v321_v31  ;;  %v2266_v37 = vld [vmem:[%s2838_s4 + $0x18] sm:$0xff]  ;;  %v327_v40 = vld [vmem:[%s2836_s2 + $0x1d0] sm:$0xff] }
  0x1d   : > { %1713 = vmatpush1.bf16.msra.mxu0 %v1712_v38  ;;  %805 = vperm.xlu1 %1842, %v2110_v45   ;;  %v1746_v38 = vpack.c.bf16 %v328_v34, %v326_v33  ;;  %v330_v41 = vld [vmem:[%s2836_s2 + $0x1e8] sm:$0xff]  ;;  %v332_v43 = vld [vmem:[%s2836_s2 + $0x1f8] sm:$0xff]  ;;  %v329_v51 = vld [vmem:[%s2836_s2 + $0x1e0] sm:$0xff] }
  0x1e   : > { %1715 = vmatprep.subr.bf16.mxu0 %v1714_v39  ;;  %636 = vperm.xlu0 %1840, %v2178_v5   ;;  %v325_v39 = vld [vmem:[%s2836_s2 + $0x1c0] sm:$0xff]  ;;  %v2286_v44 = vld [vmem:[%s2838_s4 + $0xa8] sm:$0xff]  ;;  %v1750_v50 = vpack.c.bf16 %v332_v43, %v330_v41  ;;  %v331_v52 = vld [vmem:[%s2836_s2 + $0x1f0] sm:$0xff] }
  0x1f   : > { %v2301_v53 = vld [vmem:[%s2838_s4 + $0x38] sm:$0xff]  ;;  %v2311_v57 = vld [vmem:[%s2089_s10] sm:$0xff]  ;;  %v614_v2 = vld [vmem:[%s2838_s4 + $0x70] sm:$0xff] }
  0x20   : > { %v619_v59 = vld [vmem:[%s2838_s4 + $0x98] sm:$0xff]  ;;  %v2428_v24 = vld [vmem:[%s261_s11 + $0x1] ss:$0 sm:$0xff] }
  0x21   : > { %1717 = vmatpush1.bf16.msra.mxu0 %v1716_v46  ;;  %1843 = vset.pattern.permute.xlu1 %v1948_v7  ;;  %v1748_v46 = vpack.c.bf16 %v327_v40, %v325_v39  ;;  %v2352_v60 = vld [vmem:[%s2838_s4 + $0xb8] sm:$0xff] }
  0x22   : > { %1719 = vmatprep.subr.bf16.mxu0 %v1718_v49  ;;  %706 = vperm.xlu1 %1843, %v2197_v13   ;;  %v611_v49 = vld [vmem:[%s2838_s4 + $0x58] sm:$0xff] }
  0x23   : > { %676 = vperm.xlu0 %1840, %v2202_v14  }
  0x25   : > { %1721 = vmatpush1.bf16.msra.mxu0 %v1720_v54  ;;  %v1752_v54 = vpack.c.bf16 %v331_v52, %v329_v51 }
  0x26   : > { %1723 = vmatprep.subr.bf16.mxu0 %v1722_v56  ;;  %1844 = vset.pattern.permute.xlu1 %v1949_v61  ;;  %v2308_v56 = vld [vmem:[%s2838_s4 + $0xb0] sm:$0xff] }
  0x27   : > { %837 = vperm.xlu1 %1844, %v2197_v13   ;;  %716 = vperm.xlu0 %1840, %v2222_v21  }
  0x29   : > { %1725 = vmatpush1.bf16.msra.mxu0 %v1724_v62  ;;  %v612_v62 = vld [vmem:[%s2838_s4 + $0x60] sm:$0xff] }
  0x2a   : > { %1727 = vmatprep.subr.bf16.mxu0 %v1726_v0 }
  0x2b   : > { %841 = vperm.xlu1 %1844, %v2160_v63   ;;  %646 = vperm.xlu0 %1840, %v2242_v28  }
  0x2d   : > { %1729 = vmatpush1.bf16.msra.mxu0 %v1728_v6 }
  0x2e   : > { %1731 = vmatprep.subr.bf16.mxu0 %v1730_v8 }
  0x2f   : > { %1845 = vset.pattern.permute.xlu1 %v1948_v7  ;;  %691 = vperm.xlu0 %1840, %v2261_v35  }
  0x30   : > { %641 = vperm.xlu1 %1845, %v2266_v37  }
  0x31   : > { %1733 = vmatpush1.bf16.msra.mxu0 %v1732_v15 }
  0x32   : > { %1735 = vmatprep.subr.bf16.mxu0 %v1734_v16 }
  0x33   : > { %731 = vperm.xlu0 %1840, %v2286_v44  }
  0x34   : > { %681 = vperm.xlu1 %1845, %v611_v49  }
  0x35   : > { %1737 = vmatpush1.bf16.msra.mxu0 %v1736_v22 }
  0x36   : > { %1739 = vmatprep.subr.bf16.mxu0 %v1738_v23 }
  0x37   : > { %661 = vperm.xlu0 %1840, %v2301_v53  }
  0x38   : > { %1846 = vset.pattern.permute.xlu1 %v1949_v61 }
  0x39   : > { %1741 = vmatpush1.bf16.msra.mxu0 %v1740_v29  ;;  %785 = vperm.xlu1 %1846, %v2266_v37  }
  0x3a   : > { %1743 = vmatprep.subr.bf16.mxu0 %v1742_v30 }
  0x3b   : > { %736 = vperm.xlu0 %1840, %v2308_v56  }
  0x3d   : > { %1745 = vmatpush1.bf16.msra.mxu0 %v1744_v36  ;;  %813 = vperm.xlu1 %1846, %v2202_v14  }
  0x3e   : > { %1747 = vmatprep.subr.bf16.mxu0 %v1746_v38 }
  0x3f   : > { %1860 = vset.pattern.permute.xlu0 %v1949_v61 }
  0x40   : > { %773 = vperm.xlu0 %1860, %v2121_v48  }
  0x41   : > { %1749 = vmatpush1.bf16.msra.mxu0 %v1748_v46  ;;  %1847 = vset.pattern.permute.xlu1 %v1950_v58 }
  0x42   : > { %1751 = vmatprep.subr.bf16.mxu0 %v1750_v50  ;;  %921 = vperm.xlu1 %1847, %v2121_v48   ;;  %v2333_v48 = vld [vmem:[%s2838_s4 + $0x28] sm:$0xff] }
  0x44   : > { %809 = vperm.xlu0 %1860, %v2116_v47  }
  0x45   : > { %1753 = vmatpush1.bf16.msra.mxu0 %v1752_v54 }
  0x46   : > { %953 = vperm.xlu1 %1847, %v2110_v45   ;;  %v2340_v45 = vld [vmem:[%s2838_s4 + $0x30] sm:$0xff] }
  0x48   : > { %406 = vmatmul.mubr.f32.vlgmr.msra.gmra.mrb[0].mxu0 %v2311_v57  ;;  %781 = vperm.xlu0 %1860, %v2178_v5  }
  0x49   : > { %1687 = vmatprep.mubr.msk.f32.mxu0 %vm1955_vm2, %v1951_v12 }
  0x4a   : > { %957 = vperm.xlu1 %1847, %v2116_v47   ;;  %v615_v47 = vld [vmem:[%s2838_s4 + $0x78] sm:$0xff] }
  0x4c   : > { %817 = vperm.xlu0 %1860, %v611_v49  }
  0x4e   : > { %1848 = vset.pattern.permute.xlu1 %v1948_v7 }
  0x4f   : > { %721 = vperm.xlu1 %1848, %v619_v59  }
  0x50   : > { %849 = vperm.xlu0 %1860, %v619_v59  }
  0x53   : > { %1849 = vset.pattern.permute.xlu1 %v1949_v61 }
  0x54   : > { %845 = vperm.xlu1 %1849, %v2222_v21   ;;  %793 = vperm.xlu0 %1860, %v2333_v48  }
  0x58   : > { %1850 = vset.pattern.permute.xlu1 %v1950_v58  ;;  %797 = vperm.xlu0 %1860, %v2340_v45  }
  0x59   : > { %985 = vperm.xlu1 %1850, %v2197_v13  }
  0x5c   : > { %833 = vperm.xlu0 %1860, %v615_v47  }
  0x5d   : > { %989 = vperm.xlu1 %1850, %v2160_v63  }
  0x60   : > { %865 = vperm.xlu0 %1860, %v2352_v60  }
  0x61   : > { %1851 = vset.pattern.permute.xlu1 %v1948_v7 }
  0x62   : > { %651 = vperm.xlu1 %1851, %v2333_v48  }
  0x64   : > { %1863 = vset.pattern.permute.xlu0 %v1950_v58 }
  0x65   : > { %925 = vperm.xlu0 %1863, %v2140_v55   ;;  %v620_v55 = vld [vmem:[%s2838_s4 + $0xa0] sm:$0xff] }
  0x66   : > { %686 = vperm.xlu1 %1851, %v612_v62  }
  0x69   : > { %929 = vperm.xlu0 %1863, %v2178_v5  }
  0x6a   : > { %1852 = vset.pattern.permute.xlu1 %v1949_v61 }
  0x6b   : > { %789 = vperm.xlu1 %1852, %v2242_v28  }
  0x6d   : > { %965 = vperm.xlu0 %1863, %v611_v49  }
  0x6f   : > { %821 = vperm.xlu1 %1852, %v612_v62  }
  0x71   : > { %993 = vperm.xlu0 %1863, %v2222_v21   ;;  %v2421_v21 = vld [vmem:[%s261_s11] ss:$0 sm:$0xff] }
  0x73   : > { %825 = vperm.xlu1 %1852, %v2261_v35  }
  0x75   : > { %941 = vperm.xlu0 %1863, %v2333_v48  }
  0x77   : > { %1853 = vset.pattern.permute.xlu1 %v1950_v58 }
  0x78   : > { %933 = vperm.xlu1 %1853, %v2266_v37  }
  0x79   : > { %945 = vperm.xlu0 %1863, %v2340_v45  }
  0x7c   : > { %961 = vperm.xlu1 %1853, %v2202_v14  }
  0x7d   : > { %981 = vperm.xlu0 %1863, %v615_v47  }
  0x80   : > { %1854 = vset.pattern.permute.xlu1 %v1948_v7 }
  0x81   : > { %726 = vperm.xlu1 %1854, %v620_v55   ;;  %1013 = vperm.xlu0 %1863, %v2352_v60  }
  0x85   : > { %1855 = vset.pattern.permute.xlu1 %v1949_v61 }
  0x86   : > { %853 = vperm.xlu1 %1855, %v620_v55  }
  0x8a   : > { %857 = vperm.xlu1 %1855, %v2286_v44  }
  0x8e   : > { %1856 = vset.pattern.permute.xlu1 %v1950_v58 }
  0x8f   : > { %997 = vperm.xlu1 %1856, %v619_v59   ;;  %v2380_v63 = vpop.permute.xlu1 %666 }
  0x91   : > { %v2382_v0 = vpop.permute.xlu0 %626 }
  0x93   : > { %1857 = vset.pattern.permute.xlu1 %v1948_v7  ;;  %v2385_v1 = vpop.permute.xlu1 %671 }
  0x94   : > { %656 = vperm.xlu1 %1857, %v2340_v45  }
  0x95   : > { %v2391_v3 = vpop.permute.xlu0 %631 }
  0x98   : > { %696 = vperm.xlu1 %1857, %v614_v2   ;;  %v2393_v4 = vpop.permute.xlu1 %777 }
  0x99   : > { %v2395_v6 = vpop.permute.xlu0 %711 }
  0x9c   : > { %701 = vperm.xlu1 %1857, %v615_v47   ;;  %v2397_v8 = vpop.permute.xlu1 %805 }
  0x9d   : > { %v637_v9 = vpop.permute.xlu0 %636 }
  0xa0   : > { %1858 = vset.pattern.permute.xlu1 %v1949_v61 }
  0xa1   : > { %801 = vperm.xlu1 %1858, %v2301_v53   ;;  %v2401_v10 = vpop.permute.xlu1 %706 }
  0xa2   : > { %v677_v11 = vpop.permute.xlu0 %676 }
  0xa3   : > { %v758_v29 = vmul.f32 %v2421_v21, %v677_v11 }
  0xa5   : > { %829 = vperm.xlu1 %1858, %v614_v2  }
  0xa6   : > { %v2404_v13 = vpop.permute.xlu1 %837  ;;  %v717_v14 = vpop.permute.xlu0 %716 }
  0xa9   : > { %1859 = vset.pattern.permute.xlu1 %v1950_v58 }
  0xaa   : > { %937 = vperm.xlu1 %1859, %v2242_v28   ;;  %v2408_v15 = vpop.permute.xlu1 %841  ;;  %v2410_v16 = vpop.permute.xlu0 %646 }
  0xae   : > { %969 = vperm.xlu1 %1859, %v612_v62   ;;  %v2412_v17 = vpop.permute.xlu0 %691 }
  0xaf   : > { %v642_v18 = vpop.permute.xlu1 %641 }
  0xb0   : > { %v751_v23 = vmul.f32 %v2421_v21, %v642_v18 }
  0xb2   : > { %973 = vperm.xlu1 %1859, %v2261_v35   ;;  %v2416_v19 = vpop.permute.xlu0 %731 }
  0xb3   : > { %v682_v20 = vpop.permute.xlu1 %681 }
  0xb4   : > { %v759_v41 = vmul.f32 %v2421_v21, %v682_v20 }
  0xb6   : > { %1861 = vset.pattern.permute.xlu1 %v1948_v7  ;;  %v2424_v22 = vpop.permute.xlu0 %661 }
  0xb7   : > { %741 = vperm.xlu1 %1861, %v2352_v60  }
  0xb8   : > { %v786_v25 = vpop.permute.xlu1 %785 }
  0xb9   : > { %v875_v26 = vmul.f32 %v2428_v24, %v786_v25 }
  0xba   : > { %v2431_v27 = vpop.permute.xlu0 %736 }
  0xbb   : > { %1862 = vset.pattern.permute.xlu1 %v1949_v61  ;;  %v899_v30 = vadd.f32 %v875_v26, %v751_v23  ;;  %v750_v61 = vmul.f32 %v2421_v21, %v637_v9  ;;  %v752_v26 = vmul.f32 %v2421_v21, %v2410_v16 }
  0xbc   : > { %861 = vperm.xlu1 %1862, %v2308_v56   ;;  %v814_v7 = vpop.permute.xlu1 %813 }
  0xbd   : > { %v882_v31 = vmul.f32 %v2428_v24, %v814_v7 }
  0xbf   : > { %v2437_v32 = vpop.permute.xlu0 %773  ;;  %v906_v33 = vadd.f32 %v882_v31, %v758_v29 }
  0xc0   : > { %1864 = vset.pattern.permute.xlu1 %v1950_v58  ;;  %v766_v58 = vmul.f32 %v2421_v21, %v717_v14 }
  0xc1   : > { %1001 = vperm.xlu1 %1864, %v620_v55   ;;  %v2440_v34 = vpop.permute.xlu1 %921 }
  0xc3   : > { %v2442_v35 = vpop.permute.xlu0 %809 }
  0xc5   : > { %1005 = vperm.xlu1 %1864, %v2286_v44   ;;  %v2445_v36 = vpop.permute.xlu1 %953 }
  0xc7   : > { %v782_v38 = vpop.permute.xlu0 %781 }
  0xc8   : > { %v874_v39 = vmul.f32 %v2428_v24, %v782_v38 }
  0xc9   : > { %949 = vperm.xlu1 %1864, %v2301_v53   ;;  %v2450_v40 = vpop.permute.xlu1 %957 }
  0xca   : > { %v898_v43 = vadd.f32 %v874_v39, %v750_v61 }
  0xcb   : > { %v818_v46 = vpop.permute.xlu0 %817 }
  0xcc   : > { %v883_v49 = vmul.f32 %v2428_v24, %v818_v46  ;;  %v761_v46 = vmul.f32 %v2421_v21, %v2412_v17 }
  0xcd   : > { %977 = vperm.xlu1 %1864, %v614_v2  }
  0xce   : > { %v722_v50 = vpop.permute.xlu1 %721  ;;  %v907_v44 = vadd.f32 %v883_v49, %v759_v41 }
  0xcf   : > { %v767_v51 = vmul.f32 %v2421_v21, %v722_v50  ;;  %v850_v52 = vpop.permute.xlu0 %849 }
  0xd0   : > { %v891_v54 = vmul.f32 %v2428_v24, %v850_v52 }
  0xd1   : > { %1009 = vperm.xlu1 %1864, %v2308_v56  }
  0xd2   : > { %v915_v59 = vadd.f32 %v891_v54, %v767_v51 }
  0xd3   : > { %v846_v47 = vpop.permute.xlu1 %845  ;;  %v794_v9 = vpop.permute.xlu0 %793 }
  0xd4   : > { %v890_v60 = vmul.f32 %v2428_v24, %v846_v47  ;;  %v877_v11 = vmul.f32 %v2428_v24, %v794_v9 }
  0xd6   : > { %v914_v62 = vadd.f32 %v890_v60, %v766_v58 }
  0xd7   : > { %v2464_v20 = vpop.permute.xlu0 %797 }
  0xd8   : > { %v2459_v55 = vpop.permute.xlu1 %985 }
  0xdb   : > { %v2469_v25 = vpop.permute.xlu0 %833 }
  0xdc   : > { %v2461_v2 = vpop.permute.xlu1 %989 }
  0xdf   : > { %v2475_v61 = vpop.permute.xlu0 %865 }
  0xe1   : > { %v652_v18 = vpop.permute.xlu1 %651 }
  0xe2   : > { %v753_v23 = vmul.f32 %v2421_v21, %v652_v18  ;;  %v333_v18 = vlaneseq }
  0xe4   : > { %v2467_v56 = vadd.f32 %v877_v11, %v753_v23  ;;  %v2484_v51 = vpop.permute.xlu0 %925 }
  0xe5   : > { %v687_v14 = vpop.permute.xlu1 %686 }
  0xe6   : > { %v760_v31 = vmul.f32 %v2421_v21, %v687_v14 }
  0xe8   : > { %v930_v58 = vpop.permute.xlu0 %929 }
  0xe9   : > { %v1018_v14 = vadd.f32 %v930_v58, %v898_v43  ;;  %v268_v43 = vld [vmem:[%s2836_s2 + $0x208] sm:$0x7] }
  0xea   : > { %v790_v29 = vpop.permute.xlu1 %789 }
  0xeb   : > { %v876_v7 = vmul.f32 %v2428_v24, %v790_v29  ;;  %1869 = vtanh.f32 %v1018_v14 }
  0xec   : > { %v966_v11 = vpop.permute.xlu0 %965 }
  0xed   : > { %v2477_v38 = vadd.f32 %v876_v7, %v752_v26  ;;  %v334_v26 = vshrl.u32 %v333_v18, 7  ;;  %v1027_v7 = vadd.f32 %v966_v11, %v907_v44 }
  0xee   : > { %v822_v39 = vpop.permute.xlu1 %821 }
  0xef   : > { %v884_v41 = vmul.f32 %v2428_v24, %v822_v39  ;;  %v335_v39 = vsub.s32 0, %v334_v26  ;;  %v872_v26 = vmul.f32 %v2428_v24, %v2437_v32  ;;  %v873_v32 = vmul.f32 %v2428_v24, %v2393_v4  ;;  %v510_v4 = vld [vmem:[%s2837_s3 + $0x80] sm:$0xff] }
  0xf0   : > { %v994_v17 = vpop.permute.xlu0 %993 }
  0xf1   : > { %v2482_v49 = vadd.f32 %v884_v41, %v760_v31  ;;  %v1034_v31 = vadd.f32 %v994_v17, %v914_v62  ;;  %v340_v41 = vrot.slane %v268_v43, %v335_v39  ;;  %v757_v43 = vmul.f32 %v2421_v21, %v2385_v1 }
  0xf2   : > { %v826_v50 = vpop.permute.xlu1 %825 }
  0xf3   : > { %v885_v16 = vmul.f32 %v2428_v24, %v826_v50 }
  0xf5   : > { %v2487_v52 = vadd.f32 %v885_v16, %v761_v46  ;;  %v1870_v16 = vpop.eup %1869 }
  0xf7   : > { %v934_v54 = vpop.permute.xlu1 %933 }
  0xf8   : > { %v1019_v47 = vadd.f32 %v934_v54, %v899_v30  ;;  %v2496_v30 = vld [vmem:[%s2836_s2 + $0x200] sm:$0x7] }
  0xf9   : > { %v336_v44 = vrot.slane %v2496_v30, %v335_v39 }
  0xfb   : > { %v962_v60 = vpop.permute.xlu1 %961 }
  0xfc   : > { %v1026_v9 = vadd.f32 %v962_v60, %v906_v33 }
  0xfe   : > { %1871 = vtanh.f32 %v1026_v9 }
  0xff   : > { %1873 = vtanh.f32 %v1027_v7  ;;  %v756_v7 = vmul.f32 %v2421_v21, %v2380_v63  ;;  %v749_v63 = vmul.f32 %v2421_v21, %v2391_v3  ;;  %v511_v3 = vld [vmem:[%s2837_s3 + $0x88] sm:$0xff] }
 0x100   : > { %v2489_v23 = vpop.permute.xlu1 %726  ;;  %1875 = vtanh.f32 %v1034_v31  ;;  %v880_v31 = vmul.f32 %v2428_v24, %v2397_v8 }
 0x101   : > { %1877 = vtanh.f32 %v1019_v47 }
 0x102   : > { %v904_v1 = vadd.f32 %v880_v31, %v756_v7  ;;  %v494_v31 = vld [vmem:[%s2837_s3] sm:$0xff] }
 0x105   : > { %v2491_v29 = vpop.permute.xlu1 %853 }
 0x108   : > { %v2504_v60 = vpop.eup %1871 }
 0x109   : > { %v2498_v33 = vpop.permute.xlu1 %857  ;;  %v2506_v11 = vpop.eup %1873  ;;  %v2511_v14 = vsub.f32 %v1870_v16, %v2504_v60  ;;  %v888_v16 = vmul.f32 %v2428_v24, %v2404_v13  ;;  %v889_v13 = vmul.f32 %v2428_v24, %v2408_v15  ;;  %v1754_v15 = vpack.c.bf16 %v511_v3, %v510_v4 }
 0x10a   : > { %v1876_v47 = vpop.eup %1875 }
 0x10b   : > { %v1878_v17 = vpop.eup %1877 }
 0x10e   : > { %v998_v62 = vpop.permute.xlu1 %997 }
 0x10f   : > { %v1035_v50 = vadd.f32 %v998_v62, %v915_v59  ;;  %v748_v59 = vmul.f32 %v2421_v21, %v2382_v0  ;;  %v1074_v0 = vmul.f32 %v1876_v47, %v2511_v14  ;;  %v765_v47 = vmul.f32 %v2421_v21, %v2395_v6 }
 0x110   : > { %v1024_v6 = vadd.f32 %v2445_v36, %v904_v1 }
 0x111   : > { %1879 = vtanh.f32 %v1035_v50  ;;  %v896_v8 = vadd.f32 %v872_v26, %v748_v59  ;;  %v897_v59 = vadd.f32 %v873_v32, %v749_v63  ;;  %v513_v32 = vld [vmem:[%s2837_s3 + $0x98] sm:$0xff]  ;;  %v913_v1 = vadd.f32 %v889_v13, %v765_v47  ;;  %v498_v13 = vld [vmem:[%s2837_s3 + $0x20] sm:$0xff] }
 0x113   : > { %v2508_v18 = vpop.permute.xlu1 %656  ;;  %v1016_v26 = vadd.f32 %v2440_v34, %v896_v8  ;;  %v512_v34 = vld [vmem:[%s2837_s3 + $0x90] sm:$0xff] }
 0x117   : > { %v2521_v39 = vpop.permute.xlu1 %696 }
 0x11b   : > { %v407_v46 = vpop.f32.mrb[0].mxu0  ;;  %v1880_v62 = vpop.eup %1879 }
 0x11c   : > { %v408_v54 = vadd.f32 %v407_v46, %v336_v44  ;;  %v409_v58 = vpop.f32.mrb[1].mxu0  ;;  %v881_v44 = vmul.f32 %v2428_v24, %v2442_v35  ;;  %v764_v46 = vmul.f32 %v2421_v21, %v2401_v10  ;;  %v2537_v50 = vpop.permute.xlu1 %701  ;;  %v1082_v10 = vadd.f32 %v2504_v60, %v1074_v0 }
 0x11d   : > { %v410_v9 = vadd.f32 %v409_v58, %v340_v41  ;;  %v2528_v41 = vsub.f32 %v1878_v17, %v2506_v11  ;;  %v419_v0 = vrot.slane %v2496_v30, 2 }
 0x11e   : > { %1881 = vtanh.f32 %v408_v54  ;;  %v905_v54 = vadd.f32 %v881_v44, %v757_v43  ;;  %v495_v43 = vld [vmem:[%s2837_s3 + $0x8] sm:$0xff]  ;;  %v912_v8 = vadd.f32 %v888_v16, %v764_v46 }
 0x11f   : > { %1883 = vtanh.f32 %v410_v9  ;;  %v1075_v58 = vmul.f32 %v1880_v62, %v2528_v41  ;;  %v1756_v3 = vpack.c.bf16 %v495_v43, %v494_v31  ;;  %v500_v31 = vld [vmem:[%s2837_s3 + $0x30] sm:$0xff]  ;;  %v501_v43 = vld [vmem:[%s2837_s3 + $0x38] sm:$0xff] }
 0x120   : > { %v1025_v63 = vadd.f32 %v2450_v40, %v905_v54  ;;  %1885 = vtanh.f32 %v1016_v26  ;;  %v496_v40 = vld [vmem:[%s2837_s3 + $0x10] sm:$0xff]  ;;  %v1032_v46 = vadd.f32 %v2459_v55, %v912_v8  ;;  %v1033_v54 = vadd.f32 %v2461_v2, %v913_v1  ;;  %v499_v55 = vld [vmem:[%s2837_s3 + $0x28] sm:$0xff]  ;;  %v517_v2 = vld [vmem:[%s2837_s3 + $0xb8] sm:$0xff] }
 0x121   : > { %v1083_v44 = vadd.f32 %v2506_v11, %v1075_v58  ;;  %v1017_v58 = vadd.f32 %v2484_v51, %v897_v59  ;;  %1887 = vtanh.f32 %v1024_v6  ;;  %v515_v51 = vld [vmem:[%s2837_s3 + $0xa8] sm:$0xff]  ;;  %v1764_v59 = vpack.c.bf16 %v499_v55, %v498_v13  ;;  %v522_v13 = vld [vmem:[%s2837_s3 + $0xe0] sm:$0xff] }
 0x122   : > { %1889 = vtanh.f32 %v1025_v63  ;;  %v519_v6 = vld [vmem:[%s2837_s3 + $0xc8] sm:$0xff] }
 0x123   : > { %v2573_v36 = vpack.c.bf16 %v1083_v44, %v1082_v10  ;;  %1891 = vtanh.f32 %v1017_v58  ;;  %v518_v44 = vld [vmem:[%s2837_s3 + $0xc0] sm:$0xff]  ;;  %v503_v1 = vld [vmem:[%s2837_s3 + $0x48] sm:$0xff]  ;;  %v521_v58 = vld [vmem:[%s2837_s3 + $0xd8] sm:$0xff] }
 0x124   : > { %1893 = vtanh.f32 %v1032_v46  ;;  %v1770_v8 = vpack.c.bf16 %v519_v6, %v518_v44  ;;  %v505_v46 = vld [vmem:[%s2837_s3 + $0x58] sm:$0xff]  ;;  %v523_v55 = vld [vmem:[%s2837_s3 + $0xe8] sm:$0xff] }
 0x125   : > { %1895 = vtanh.f32 %v1033_v54 }
 0x128   : > { %v1882_v35 = vpop.eup %1881 }
 0x129   : > { %v1884_v9 = vpop.eup %1883  ;;  %v414_v17 = vmul.f32 0.01, %v1882_v35  ;;  %v2571_v35 = vpop.permute.xlu1 %801 }
 0x12a   : > { %v415_v7 = vmul.f32 0.01, %v1884_v9  ;;  %v1758_v9 = vpack.c.bf16 %v513_v32, %v512_v34  ;;  %v1768_v34 = vpack.c.bf16 %v501_v43, %v500_v31  ;;  %v507_v31 = vld [vmem:[%s2837_s3 + $0x68] sm:$0xff] }
 0x12b   : > { %v416_v4 = vadd.f32 %v414_v17, %v2311_v57  ;;  %v514_v57 = vld [vmem:[%s2837_s3 + $0xa0] sm:$0xff]  ;;  %v516_v17 = vld [vmem:[%s2837_s3 + $0xb0] sm:$0xff] }
 0x12c   : > { %v417_v62 = vadd.f32 %v415_v7, %v2098_v42  ;;  %v497_v42 = vld [vmem:[%s2837_s3 + $0x18] sm:$0xff]  ;;  %v1762_v47 = vpack.c.bf16 %v515_v51, %v514_v57  ;;  %v1766_v7 = vpack.c.bf16 %v517_v2, %v516_v17  ;;  %v504_v51 = vld [vmem:[%s2837_s3 + $0x50] sm:$0xff]  ;;  %v942_v17 = vpop.permute.xlu0 %941 }
 0x12d   : > { %v2591_v16 = vpop.permute.xlu1 %829  ;;  %v1760_v10 = vpack.c.bf16 %v497_v42, %v496_v40  ;;  %v1776_v2 = vpack.c.bf16 %v505_v46, %v504_v51  ;;  %v763_v51 = vmul.f32 %v2421_v21, %v2537_v50  ;;  %v1021_v46 = vadd.f32 %v942_v17, %v2467_v56 }
 0x12e   : > { %423 = vmatprep.subr.mxu1 %v417_v62  ;;  %v502_v62 = vld [vmem:[%s2837_s3 + $0x40] sm:$0xff]  ;;  %v895_v50 = vmul.f32 %v2428_v24, %v2475_v61  ;;  %v754_v56 = vmul.f32 %v2421_v21, %v2508_v18 }
 0x12f   : > { %424 = vmatpush1.msra.mxu1 %v416_v4 }
 0x130   : > { %1542 = vmatmul.mubr.msk.f32.vlgmr.msra.gmra.mrb[0].mxu1 %vm420_vm0, %v419_v0  ;;  %1755 = vmatprep.subr.bf16.mxu1 %v1754_v15  ;;  %v1886_v0 = vpop.eup %1885 }
 0x131   : > { %1757 = vmatpush3.bf16.msra.mxu1 %v1756_v3  ;;  %v938_v26 = vpop.permute.xlu1 %937  ;;  %v2618_v15 = vpop.eup %1887  ;;  %v520_v3 = vld [vmem:[%s2837_s3 + $0xd0] sm:$0xff] }
 0x132   : > { %1759 = vmatprep.subr.bf16.mxu1 %v1758_v9  ;;  %v2620_v63 = vpop.eup %1889  ;;  %v1772_v9 = vpack.c.bf16 %v503_v1, %v502_v62  ;;  %v1774_v57 = vpack.c.bf16 %v521_v58, %v520_v3  ;;  %v2641_v54 = vsub.f32 %v1886_v0, %v2618_v15  ;;  %v524_v0 = vld [vmem:[%s2837_s3 + $0xf0] sm:$0xff]  ;;  %v768_v62 = vmul.f32 %v2421_v21, %v2489_v23 }
 0x133   : > { %v1892_v4 = vpop.eup %1891 }
 0x134   : > { %v1894_v42 = vpop.eup %1893 }
 0x135   : > { %1761 = vmatpush3.bf16.msra.mxu1 %v1760_v10  ;;  %v970_v32 = vpop.permute.xlu1 %969  ;;  %v2644_v10 = vsub.f32 %v1892_v4, %v2620_v63  ;;  %v1072_v43 = vmul.f32 %v1894_v42, %v2641_v54  ;;  %v892_v4 = vmul.f32 %v2428_v24, %v2491_v29  ;;  %v946_v42 = vpop.permute.xlu0 %945  ;;  %v769_v29 = vmul.f32 %v2421_v21, %v2416_v19 }
 0x136   : > { %1763 = vmatprep.subr.bf16.mxu1 %v1762_v47  ;;  %v1896_v47 = vpop.eup %1895  ;;  %v1028_v3 = vadd.f32 %v970_v32, %v2482_v49  ;;  %v887_v49 = vmul.f32 %v2428_v24, %v2469_v25  ;;  %v755_v25 = vmul.f32 %v2421_v21, %v2424_v22 }
 0x137   : > { %v1073_v44 = vmul.f32 %v1896_v47, %v2644_v10 }
 0x139   : > { %1765 = vmatpush3.bf16.msra.mxu1 %v1764_v59  ;;  %v974_v40 = vpop.permute.xlu1 %973  ;;  %v1778_v59 = vpack.c.bf16 %v523_v55, %v522_v13  ;;  %v1081_v23 = vadd.f32 %v2620_v63, %v1073_v44  ;;  %v916_v55 = vadd.f32 %v892_v4, %v768_v62 }
 0x13a   : > { %1767 = vmatprep.subr.bf16.mxu1 %v1766_v7  ;;  %v506_v7 = vld [vmem:[%s2837_s3 + $0x60] sm:$0xff]  ;;  %v1029_v13 = vadd.f32 %v974_v40, %v2487_v52  ;;  %v982_v52 = vpop.permute.xlu0 %981  ;;  %v911_v40 = vadd.f32 %v887_v49, %v763_v51 }
 0x13b   : > { %v1780_v1 = vpack.c.bf16 %v507_v31, %v506_v7 }
 0x13c   : > { %v1031_v31 = vadd.f32 %v982_v52, %v911_v40 }
 0x13d   : > { %1769 = vmatpush3.bf16.msra.mxu1 %v1768_v34  ;;  %v742_v6 = vpop.permute.xlu1 %741  ;;  %v525_v34 = vld [vmem:[%s2837_s3 + $0xf8] sm:$0xff] }
 0x13e   : > { %1771 = vmatprep.subr.bf16.mxu1 %v1770_v8  ;;  %v1020_v8 = vadd.f32 %v938_v26, %v2477_v38  ;;  %v1782_v58 = vpack.c.bf16 %v525_v34, %v524_v0  ;;  %v509_v38 = vld [vmem:[%s2837_s3 + $0x78] sm:$0xff]  ;;  %v1080_v26 = vadd.f32 %v2618_v15, %v1072_v43  ;;  %v771_v22 = vmul.f32 %v2421_v21, %v742_v6 }
 0x13f   : > { %v886_v43 = vmul.f32 %v2428_v24, %v2591_v16  ;;  %v770_v6 = vmul.f32 %v2421_v21, %v2431_v27 }
 0x140   : > { %1897 = vtanh.f32 %v1020_v8  ;;  %v2690_v19 = vpack.c.bf16 %v1081_v23, %v1080_v26  ;;  %v919_v34 = vadd.f32 %v895_v50, %v771_v22  ;;  %v1014_v8 = vpop.permute.xlu0 %1013 }
 0x141   : > { %1773 = vmatpush3.bf16.msra.mxu1 %v1772_v9  ;;  %v508_v9 = vld [vmem:[%s2837_s3 + $0x70] sm:$0xff]  ;;  %v862_v32 = vpop.permute.xlu1 %861  ;;  %1899 = vtanh.f32 %v1028_v3 }
 0x142   : > { %1775 = vmatprep.subr.bf16.mxu1 %v1774_v57  ;;  %v893_v57 = vmul.f32 %v2428_v24, %v2498_v33  ;;  %v1784_v47 = vpack.c.bf16 %v509_v38, %v508_v9  ;;  %v878_v33 = vmul.f32 %v2428_v24, %v2464_v20  ;;  %1901 = vtanh.f32 %v1021_v46 }
 0x143   : > { %1903 = vtanh.f32 %v1029_v13  ;;  %v762_v20 = vmul.f32 %v2421_v21, %v2521_v39  ;;  %v894_v39 = vmul.f32 %v2428_v24, %v862_v32  ;;  %v1039_v9 = vadd.f32 %v1014_v8, %v919_v34  ;;  %v1282_v34 = vld [vmem:[%s2839_s5 + $0x40] sm:$0xff]  ;;  %v1939_v8 = vld [vmem:[%s2838_s4 + $0x10] sm:$0xff] }
 0x144   : > { %v902_v18 = vadd.f32 %v878_v33, %v754_v56 }
 0x145   : > { %1777 = vmatpush3.bf16.msra.mxu1 %v1776_v2  ;;  %v1002_v17 = vpop.permute.xlu1 %1001  ;;  %v917_v2 = vadd.f32 %v893_v57, %v769_v29  ;;  %v918_v21 = vadd.f32 %v894_v39, %v770_v6 }
 0x146   : > { %1779 = vmatprep.subr.bf16.mxu1 %v1778_v59  ;;  %v879_v59 = vmul.f32 %v2428_v24, %v2571_v35  ;;  %v1036_v7 = vadd.f32 %v1002_v17, %v916_v55  ;;  %v1022_v4 = vadd.f32 %v946_v42, %v902_v18  ;;  %v1937_v18 = vld [vmem:[%s2838_s4] sm:$0xff] }
 0x148   : > { %1905 = vtanh.f32 %v1036_v7  ;;  %v903_v0 = vadd.f32 %v879_v59, %v755_v25 }
 0x149   : > { %1781 = vmatpush3.bf16.msra.mxu1 %v1780_v1  ;;  %v1006_v61 = vpop.permute.xlu1 %1005 }
 0x14a   : > { %1783 = vmatprep.subr.bf16.mxu1 %v1782_v58  ;;  %v1037_v44 = vadd.f32 %v1006_v61, %v917_v2  ;;  %v1898_v35 = vpop.eup %1897  ;;  %v910_v58 = vadd.f32 %v886_v43, %v762_v20  ;;  %v1952_v61 = vmov 3  }
 0x14b   : > { %v2708_v62 = vpop.eup %1899  ;;  %1865 = vset.pattern.permute.xlu1 %v1952_v61  ;;  %1866 = vset.pattern.permute.xlu0 %v1952_v61 }
 0x14c   : > { %1907 = vtanh.f32 %v1037_v44  ;;  %v1902_v16 = vpop.eup %1901  ;;  %v2714_v38 = vsub.f32 %v1898_v35, %v2708_v62  ;;  %1097 = vperm.xlu1 %1865, %v1937_v18   ;;  %v1953_v35 = vmov 4  }
 0x14d   : > { %1785 = vmatpush3.bf16.msra.mxu1 %v1784_v47  ;;  %v950_v1 = vpop.permute.xlu1 %949  ;;  %1909 = vtanh.f32 %v1031_v31  ;;  %v2716_v26 = vpop.eup %1903  ;;  %v1938_v31 = vld [vmem:[%s2838_s4 + $0x8] sm:$0xff] }
 0x14e   : > { %1787 = vmatprep.subr.bf16.mxu1 %v2690_v19  ;;  %v1023_v3 = vadd.f32 %v950_v1, %v903_v0  ;;  %v2719_v27 = vsub.f32 %v1902_v16, %v2716_v26  ;;  %1101 = vperm.xlu0 %1866, %v1938_v31   ;;  %v1088_v0 = vld [vmem:[%s2839_s5] sm:$0xff] }
 0x150   : > { %1911 = vtanh.f32 %v1023_v3  ;;  %1105 = vperm.xlu1 %1865, %v2178_v5   ;;  %v1089_v5 = vld [vmem:[%s2839_s5 + $0x8] sm:$0xff] }
 0x151   : > { %1913 = vtanh.f32 %v1022_v4  ;;  %v978_v23 = vpop.permute.xlu1 %977 }
 0x152   : > { %v1906_v29 = vpop.eup %1905  ;;  %v1030_v49 = vadd.f32 %v978_v23, %v910_v58  ;;  %1915 = vtanh.f32 %v1039_v9  ;;  %1113 = vperm.xlu0 %1866, %v2242_v28   ;;  %v1090_v28 = vld [vmem:[%s2839_s5 + $0x10] sm:$0xff] }
 0x153   : > { %v1076_v24 = vmul.f32 %v1906_v29, %v2714_v38 }
 0x154   : > { %1917 = vtanh.f32 %v1030_v49  ;;  %1109 = vperm.xlu1 %1865, %v2266_v37  }
 0x155   : > { %v1010_v42 = vpop.permute.xlu1 %1009  ;;  %v1084_v47 = vadd.f32 %v2708_v62, %v1076_v24 }
 0x156   : > { %v1908_v32 = vpop.eup %1907  ;;  %v1038_v57 = vadd.f32 %v1010_v42, %v918_v21  ;;  %1121 = vperm.xlu0 %1866, %v2340_v45   ;;  %v1093_v45 = vld [vmem:[%s2839_s5 + $0x28] sm:$0xff] }
 0x157   : > { %v2722_v51 = vpop.eup %1909  ;;  %v1077_v46 = vmul.f32 %v1908_v32, %v2719_v27 }
 0x158   : > { %1919 = vtanh.f32 %v1038_v57  ;;  %1117 = vperm.xlu1 %1865, %v2333_v48   ;;  %v1092_v48 = vld [vmem:[%s2839_s5 + $0x20] sm:$0xff] }
 0x159   : > { %v1085_v13 = vadd.f32 %v2716_v26, %v1077_v46 }
 0x15a   : > { %v1912_v55 = vpop.eup %1911  ;;  %1867 = vset.pattern.permute.xlu0 %v1953_v35 }
 0x15b   : > { %v1914_v25 = vpop.eup %1913  ;;  %v1794_v33 = vpack.c.bf16 %v1085_v13, %v1084_v47  ;;  %v2728_v50 = vsub.f32 %v1912_v55, %v2722_v51  ;;  %1287 = vperm.xlu0 %1867, %v1937_v18  }
 0x15c   : > { %v1916_v56 = vpop.eup %1915  ;;  %1125 = vperm.xlu1 %1865, %v2301_v53   ;;  %v1091_v53 = vld [vmem:[%s2839_s5 + $0x18] sm:$0xff] }
 0x15d   : > { %v1079_v52 = vmul.f32 %v1916_v56, %v2728_v50 }
 0x15e   : > { %v2730_v17 = vpop.eup %1917 }
 0x15f   : > { %v2733_v2 = vsub.f32 %v1914_v25, %v2730_v17  ;;  %v1087_v22 = vadd.f32 %v2722_v51, %v1079_v52  ;;  %1299 = vperm.xlu0 %1867, %v2266_v37  }
 0x160   : > { %1868 = vset.pattern.permute.xlu1 %v1953_v35 }
 0x161   : > { %1291 = vperm.xlu1 %1868, %v1938_v31  }
 0x162   : > { %v1920_v40 = vpop.eup %1919 }
 0x163   : > { %v1078_v59 = vmul.f32 %v1920_v40, %v2733_v2 }
 0x165   : > { %v1086_v7 = vadd.f32 %v2730_v17, %v1078_v59  ;;  %1295 = vperm.xlu1 %1868, %v1939_v8  }
 0x167   : > { %v1798_v20 = vpack.c.bf16 %v1087_v22, %v1086_v7 }
 0x1cb   : > { %v1098_v39 = vpop.permute.xlu1 %1097 }
 0x1cd   : > { %v1102_v9 = vpop.permute.xlu0 %1101 }
 0x1cf   : > { %v1106_v3 = vpop.permute.xlu1 %1105 }
 0x1d1   : > { %v1114_v37 = vpop.permute.xlu0 %1113 }
 0x1d3   : > { %v1110_v58 = vpop.permute.xlu1 %1109 }
 0x1d5   : > { %v1122_v52 = vpop.permute.xlu0 %1121 }
 0x1d7   : > { %v1118_v32 = vpop.permute.xlu1 %1117 }
 0x1db   : > { %v1126_v25 = vpop.permute.xlu1 %1125 }
 0x203   : > { %v489_v43 = vpop.f32.mrb[0].mxu1 }
 0x204   : > { %v491_v44 = vpop.f32.mrb[1].mxu1 }
 0x205   : > { %592 = vmatprep.mubr.f32.mxu1 %v491_v44 }
 0x206   : > { %593 = vmatmul.mubr.f32.vlgmr.msra.gmra.mrb[2].mxu1 %v489_v43 }
 0x207   : > { %1789 = vmatpush3.bf16.msra.mxu1 %v2690_v19  ;;  %1645 = vmatprep.mubr.msk.f32.mxu1 %vm1128_vm1, %v1088_v0  ;;  %v1095_v19 = vld [vmem:[%s2839_s5 + $0x38] sm:$0xff] }
 0x208   : > { %1791 = vmatprep.subr.bf16.mxu1 %v2573_v36 }
 0x20b   : > { %1793 = vmatpush3.bf16.msra.mxu1 %v2573_v36  ;;  %v1094_v36 = vld [vmem:[%s2839_s5 + $0x30] sm:$0xff] }
 0x20c   : > { %1795 = vmatprep.subr.bf16.mxu1 %v1794_v33 }
 0x20f   : > { %1797 = vmatpush3.bf16.msra.mxu1 %v1794_v33 }
 0x210   : > { %1799 = vmatprep.subr.bf16.mxu1 %v1798_v20 }
 0x213   : > { %1801 = vmatpush3.bf16.msra.mxu1 %v1798_v20 }
 0x216   : > { %1646 = vmatmul.mubr.msk.f32.vlgmr.msra.gmra.mrb[4].mxu1 %vm1128_vm1, %v1089_v5 }
 0x217   : > { %1648 = vmatprep.mubr.msk.f32.mxu1 %vm1128_vm1, %v1090_v28 }
 0x21a   : > { %1649 = vmatmul.mubr.msk.f32.gmra.mrb[6].mxu1 %vm1128_vm1, %v1091_v53 }
 0x21b   : > { %1651 = vmatprep.mubr.msk.f32.mxu1 %vm1128_vm1, %v1092_v48 }
 0x21e   : > { %1652 = vmatmul.mubr.msk.f32.gmra.mrb[8].mxu1 %vm1128_vm1, %v1093_v45 }
 0x21f   : > { %1654 = vmatprep.mubr.msk.f32.mxu1 %vm1128_vm1, %v1094_v36 }
 0x222   : > { %1655 = vmatmul.mubr.msk.f32.gmra.mrb[10].mxu1 %vm1128_vm1, %v1095_v19 }
 0x223   : > { %1673 = vmatprep.mubr.msk.f32.mxu1 %vm1128_vm1, %v1282_v34 }
 0x2d9   : > { %v1593_v6 = vpop.f32.mrb[2].mxu1 }
 0x2da   : > { %v1594_v1 = vpop.f32.mrb[3].mxu1 }
 0x2db   : > { %v2794_v4 = vadd.f32 %v1594_v1, %v1593_v6 }
 0x2e9   : > { %v1647_v16 = vpop.f32.mrb[4].mxu1 }
 0x2ea   : > { %v1225_v23 = vadd.f32 %v1647_v16, %v1102_v9  ;;  %v1219_v29 = vpop.f32.mrb[5].mxu1 }
 0x2eb   : > { %v1220_v49 = vadd.f32 %v1219_v29, %v1098_v39 }
 0x2ec   : > { %1921 = vtanh.f32 %v1225_v23 }
 0x2ed   : > { %1923 = vtanh.f32 %v1220_v49  ;;  %v1650_v21 = vpop.f32.mrb[6].mxu1 }
 0x2ee   : > { %v1235_v24 = vadd.f32 %v1650_v21, %v1110_v58  ;;  %v1229_v42 = vpop.f32.mrb[7].mxu1  ;;  %v526_v21 = vrot.slane %v2496_v30, 1 }
 0x2ef   : > { %v1230_v57 = vadd.f32 %v1229_v42, %v1106_v3 }
 0x2f0   : > { %1925 = vtanh.f32 %v1235_v24  ;;  %v595_v12 = vadd.f32 %v2794_v4, %v526_v21 }
 0x2f1   : > { %1927 = vtanh.f32 %v1230_v57  ;;  %v1653_v46 = vpop.f32.mrb[8].mxu1 }
 0x2f2   : > { %v1245_v47 = vadd.f32 %v1653_v46, %v1118_v32  ;;  %v1239_v13 = vpop.f32.mrb[9].mxu1 }
 0x2f3   : > { %v1240_v55 = vadd.f32 %v1239_v13, %v1114_v37 }
 0x2f4   : > { %1929 = vtanh.f32 %v1245_v47 }
 0x2f5   : > { %1931 = vtanh.f32 %v1240_v55  ;;  %v1656_v33 = vpop.f32.mrb[10].mxu1 }
 0x2f6   : > { %v1922_v56 = vpop.eup %1921  ;;  %v1255_v40 = vadd.f32 %v1656_v33, %v1126_v25  ;;  %v1249_v59 = vpop.f32.mrb[11].mxu1 }
 0x2f7   : > { %v1924_v22 = vpop.eup %1923  ;;  %v1250_v7 = vadd.f32 %v1249_v59, %v1122_v52  ;;  %v1267_v20 = vmul.f32 %v1922_v56, %v2644_v10 }
 0x2f8   : > { %1933 = vtanh.f32 %v1255_v40  ;;  %v1266_v61 = vmul.f32 %v1924_v22, %v2641_v54 }
 0x2f9   : > { %1935 = vtanh.f32 %v1250_v7  ;;  %v1275_v18 = vadd.f32 %v2620_v63, %v1267_v20 }
 0x2fa   : > { %v1926_v31 = vpop.eup %1925  ;;  %v1274_v43 = vadd.f32 %v2618_v15, %v1266_v61 }
 0x2fb   : > { %v1928_v44 = vpop.eup %1927  ;;  %v1269_v0 = vmul.f32 %v1926_v31, %v2528_v41 }
 0x2fc   : > { %v1802_v5 = vpack.c.bf16 %v1275_v18, %v1274_v43  ;;  %v1268_v28 = vmul.f32 %v1928_v44, %v2511_v14 }
 0x2fd   : > { %v1277_v53 = vadd.f32 %v2506_v11, %v1269_v0 }
 0x2fe   : > { %v1930_v48 = vpop.eup %1929  ;;  %1803 = vmatprep.subr.bf16.mxu1 %v1802_v5  ;;  %v1276_v10 = vadd.f32 %v2504_v60, %v1268_v28 }
 0x2ff   : > { %v1932_v45 = vpop.eup %1931  ;;  %1805 = vmatpush3.bf16.msra.mxu1 %v1802_v5  ;;  %v1271_v54 = vmul.f32 %v1930_v48, %v2719_v27 }
 0x300   : > { %v1806_v63 = vpack.c.bf16 %v1277_v53, %v1276_v10  ;;  %v1270_v36 = vmul.f32 %v1932_v45, %v2714_v38 }
 0x301   : > { %v1279_v15 = vadd.f32 %v2716_v26, %v1271_v54  ;;  %v1284_v26 = vld [vmem:[%s2839_s5 + $0x50] sm:$0xff] }
 0x302   : > { %v1934_v19 = vpop.eup %1933  ;;  %1807 = vmatprep.subr.bf16.mxu1 %v1806_v63  ;;  %v1278_v41 = vadd.f32 %v2708_v62, %v1270_v36  ;;  %v1283_v62 = vld [vmem:[%s2839_s5 + $0x48] sm:$0xff] }
 0x303   : > { %v1936_v14 = vpop.eup %1935  ;;  %1809 = vmatpush3.bf16.msra.mxu1 %v1806_v63  ;;  %v1273_v11 = vmul.f32 %v1934_v19, %v2728_v50  ;;  %v1954_v50 = vmov 0.0|0.0  }
 0x304   : > { %v1810_v34 = vpack.c.bf16 %v1279_v15, %v1278_v41  ;;  %v1272_v60 = vmul.f32 %v1936_v14, %v2733_v2  ;;  %1818 = vmatprep.subr.bf16.mxu0 %v1954_v50  ;;  %v1292_v2 = vpop.permute.xlu1 %1291 }
 0x305   : > { %v1281_v35 = vadd.f32 %v2722_v51, %v1273_v11  ;;  %v1285_v51 = vld [vmem:[%s2839_s5 + $0x58] sm:$0xff] }
 0x306   : > { %1811 = vmatprep.subr.bf16.mxu1 %v1810_v34  ;;  %v1280_v27 = vadd.f32 %v2730_v17, %v1272_v60  ;;  %v1288_v17 = vpop.permute.xlu0 %1287 }
 0x307   : > { %1813 = vmatpush3.bf16.msra.mxu1 %v1810_v34 }
 0x308   : > { %v1814_v38 = vpack.c.bf16 %v1281_v35, %v1280_v27  ;;  %v1296_v16 = vpop.permute.xlu1 %1295 }
 0x30a   : > { %1815 = vmatprep.subr.bf16.mxu1 %v1814_v38  ;;  %v1300_v58 = vpop.permute.xlu0 %1299 }
 0x30b   : > { %1817 = vmatpush3.bf16.msra.mxu1 %v1814_v38 }
 0x30e   : > { %1674 = vmatmul.mubr.msk.f32.vlgmr.msra.gmra.mrb[12].mxu1 %vm1128_vm1, %v1283_v62 }
 0x30f   : > { %1676 = vmatprep.mubr.msk.f32.mxu1 %vm1128_vm1, %v1284_v26 }
 0x312   : > { %1677 = vmatmul.mubr.msk.f32.gmra.mrb[14].mxu1 %vm1128_vm1, %v1285_v51 }
 0x3e1   : > { %v1675_v8 = vpop.f32.mrb[12].mxu1 }
 0x3e2   : > { %v1386_v6 = vadd.f32 %v1675_v8, %v1292_v2  ;;  %v1380_v1 = vpop.f32.mrb[13].mxu1 }
 0x3e3   : > { %v1381_v39 = vadd.f32 %v1380_v1, %v1288_v17 }
 0x3e5   : > { %v1819_v3 = vpack.c.bf16 %v1386_v6, %v1381_v39  ;;  %v1678_v9 = vpop.f32.mrb[14].mxu1 }
 0x3e6   : > { %v1396_v23 = vadd.f32 %v1678_v9, %v1300_v58  ;;  %v1390_v29 = vpop.f32.mrb[15].mxu1 }
 0x3e7   : > { %v1391_v49 = vadd.f32 %v1390_v29, %v1296_v16  ;;  %1820 = vmatpush3.bf16.msra.mxu0 %v1819_v3 }
 0x3e8   : > { %1821 = vmatprep.subr.bf16.mxu0 %v1954_v50 }
 0x3e9   : > { %v1822_v24 = vpack.c.bf16 %v1396_v23, %v1391_v49 }
 0x3eb   : > { %1823 = vmatpush3.bf16.msra.mxu0 %v1822_v24 }
 0x3ee   : > { %1688 = vmatmul.mubr.msk.f32.vlgmr.msra.gmra.mrb[2].mxu0 %vm1399_vm3, %v595_v12 }
 0x4c1   : > { %v1469_v42 = vpop.f32.mrb[2].mxu0 }
 0x4c2   : > { %v1473_v32 = vmul.f32 0.03125, %v1469_v42  ;;  %v1689_v57 = vpop.f32.mrb[3].mxu0 }
 0x4c4   : > { %1474 = vst [vmem:[%s264_s25] sm:$0x1] %v1473_v32 }
 0x4c5 PF: > { %s16_s21 = sadd.s32 1, %s1946_s21  }
 0x4c6   : > { %p13_p4 = scmp.ge.s32.totalorder %s16_s21, 10  }
 0x4c8   :  { %15 = sbr.rel (!%p13_p4) target bundleno = 1 (0x1), region = 77 }

</bundles_post_ra>
